<compile_context>
chip_gen: v5e
topology: v5e:2x2
jax: 0.10.0
libtpu: 0.0.40
codegen_flags: <defaults>
</compile_context>

<pallas_src>
import functools

import jax
import jax.numpy as jnp
from jax.experimental import pallas as pl
from jax.experimental.pallas import tpu as pltpu


_VMEM_LIMIT_BYTES = 48 * 1024 * 1024   # fits v7x's 64 MiB physical VMEM with headroom
_BLOCK_BUDGET_BYTES = 8 * 1024 * 1024  # per-grid-step block budget (double-buffered)


def _conv1x1_kernel(*refs, use_mxu):
    """refs = (x_ref[, mask_ref], w_ref, o_ref).

    x_ref: (C, T) input tile, o_ref: (OUT, T) output tile.
    w_ref: (OUT, C) for the MXU path, (C, OUT) for the VPU path.
    """
    if len(refs) == 4:
        x_ref, m_ref, w_ref, o_ref = refs
    else:
        x_ref, w_ref, o_ref = refs
        m_ref = None

    x = x_ref[...].astype(jnp.float32)              # (C, T)
    if m_ref is not None:
        # Inverted dropout: keep-mask (0/1); the 1/(1-p) scale is already
        # folded into the weight on the host.
        x = x * m_ref[...].astype(jnp.float32)

    w = w_ref[...].astype(jnp.float32)

    if use_mxu:
        # (OUT, C) @ (C, T) on the MXU, f32 accumulate.  No in-kernel transpose.
        y = jnp.dot(w, x, preferred_element_type=jnp.float32)
    else:
        # Small OUT: per output channel, broadcast-multiply along lanes (VPU)
        # and reduce over the C sublanes (XLU).  No MXU, no transpose.
        out_ch = w.shape[1]
        rows = [jnp.sum(x * w[:, o:o + 1], axis=0, keepdims=True)
                for o in range(out_ch)]
        y = rows[0] if out_ch == 1 else jnp.concatenate(rows, axis=0)

    o_ref[...] = y.astype(o_ref.dtype)


def _pick_hw_tile(C, OUT, HW, itemsize, with_mask):
    """Largest lane-dense HW tile whose block fits the per-step VMEM budget."""
    per_col = itemsize * (C * (2 if with_mask else 1) + OUT)
    if per_col * HW <= _BLOCK_BUDGET_BYTES:
        return HW
    tile = max(128, (_BLOCK_BUDGET_BYTES // per_col) // 128 * 128)
    while tile > 128 and HW % tile != 0:
        tile -= 128
    if HW % tile != 0:
        # TODO(synk): pad ragged HW to a multiple of 128 instead of falling
        # back to the full extent (which may exceed the VMEM budget).
        return HW
    return tile


def conv1x1(x, weight, *, training=False, p_drop=0.5, dropout_key=None):
    """Forward of Conv1x1: Dropout(p_drop) -> 1x1 conv (no bias).

    x:      (N, C, H, W) float32 (NCHW, as in PyTorch).
    weight: (OUT, C) float32  (torch Conv2d weight (OUT, C, 1, 1) squeezed).
    Returns (N, OUT, H, W).
    """
    N, C, H, W = x.shape
    OUT, Cw = weight.shape
    assert Cw == C
    assert 0.0 <= p_drop < 1.0, "p_drop must be in [0, 1)"
    HW = H * W

    x2 = x.reshape(N, C, HW)

    apply_mask = bool(training) and p_drop > 0.0
    if apply_mask:
        if dropout_key is None:
            dropout_key = jax.random.PRNGKey(0)
        # Keep-mask Bernoulli(1 - p); distributionally equivalent to torch's
        # Dropout but not bit-identical (different RNG).
        mask = jax.random.bernoulli(dropout_key, 1.0 - p_drop, x.shape)
        mask = mask.astype(x.dtype).reshape(N, C, HW)
        weight = weight * (1.0 / (1.0 - p_drop))   # fold dropout scale into w

    # Small OUT -> VPU/XLU channel reduction; large OUT -> MXU matmul.
    use_mxu = OUT >= 8
    w_arg = (weight.astype(jnp.float32) if use_mxu
             else weight.astype(jnp.float32).T)    # (OUT, C) / (C, OUT)

    tile_hw = _pick_hw_tile(C, OUT, HW, x.dtype.itemsize, apply_mask)
    grid = (N, HW // tile_hw)

    x_spec = pl.BlockSpec((None, C, tile_hw), lambda n, h: (n, 0, h))
    w_spec = pl.BlockSpec(w_arg.shape, lambda n, h: (0, 0))
    o_spec = pl.BlockSpec((None, OUT, tile_hw), lambda n, h: (n, 0, h))

    in_specs = [x_spec] + ([x_spec] if apply_mask else []) + [w_spec]
    args = (x2, mask, w_arg) if apply_mask else (x2, w_arg)

    kernel = functools.partial(_conv1x1_kernel, use_mxu=use_mxu)

    out = pl.pallas_call(
        kernel,
        out_shape=jax.ShapeDtypeStruct((N, OUT, HW), x.dtype),
        grid=grid,
        in_specs=in_specs,
        out_specs=o_spec,
        compiler_params=pltpu.CompilerParams(
            dimension_semantics=("parallel", "parallel"),
            vmem_limit_bytes=_VMEM_LIMIT_BYTES,
        ),
    )(*args)

    return out.reshape(N, OUT, H, W)


if __name__ == "__main__":
    key = jax.random.PRNGKey(0)
    kx, kw, kd = jax.random.split(key, 3)

    N, C, H, W = 2, 4, 16, 16
    OUT = 1

    x = jax.random.normal(kx, (N, C, H, W), dtype=jnp.float32)
    # torch Conv2d weight (OUT, C, 1, 1) squeezed to (OUT, C)
    w = jax.random.normal(kw, (OUT, C), dtype=jnp.float32) * (1.0 / jnp.sqrt(C))

    # Eval mode (Dropout is identity) -- matches module.eval().
    y = jax.block_until_ready(conv1x1(x, w, training=False))
    y_ref = jnp.einsum("oc,nchw->nohw", w, x)
    assert y.shape == (N, OUT, H, W)
    assert jnp.allclose(y, y_ref, atol=1e-5, rtol=1e-5)

    # Training mode: dropout mask drawn from jax.random (reproducible by key).
    p = 0.5
    y_tr = jax.block_until_ready(
        conv1x1(x, w, training=True, p_drop=p, dropout_key=kd))
    mask_ref = jax.random.bernoulli(kd, 1.0 - p, x.shape).astype(x.dtype)
    y_tr_ref = jnp.einsum("oc,nchw->nohw", w, x * mask_ref / (1.0 - p))
    assert y_tr.shape == (N, OUT, H, W)
    assert jnp.allclose(y_tr, y_tr_ref, atol=1e-5, rtol=1e-5)

    print("KERNEL_OK")
</pallas_src>

<mosaic_0001>
module attributes {stable_mosaic.version = 11 : i64} {
  func.func @_conv1x1_kernel(%arg0: i32, %arg1: i32, %arg2: memref<1x4x256xf32, #tpu.memory_space<vmem>>, %arg3: memref<4x1xf32, #tpu.memory_space<vmem>>, %arg4: memref<1x1x256xf32, #tpu.memory_space<vmem>>) attributes {dimension_semantics = [#tpu.dimension_semantics<parallel>, #tpu.dimension_semantics<parallel>], iteration_bounds = array<i64: 2, 1>, scalar_prefetch = 0 : i64, scratch_operands = 0 : i64, tpu.core_type = #tpu.core_type<tc>, window_params = [{transform_indices = @transform_0, window_bounds = array<i64: 1, 4, 256>}, {pipeline_mode = #tpu.pipeline_mode<synchronous>, transform_indices = @transform_1, window_bounds = array<i64: 4, 1>}, {transform_indices = @transform_2, window_bounds = array<i64: 1, 1, 256>}]} {
    %c0 = arith.constant 0 : index
    %c0_0 = arith.constant 0 : index
    %c0_1 = arith.constant 0 : index
    %0 = vector.load %arg2[%c0, %c0_0, %c0_1] : memref<1x4x256xf32, #tpu.memory_space<vmem>>, vector<1x4x256xf32>
    %1 = vector.shape_cast %0 : vector<1x4x256xf32> to vector<4x256xf32>
    %c0_2 = arith.constant 0 : index
    %c0_3 = arith.constant 0 : index
    %2 = vector.load %arg3[%c0_2, %c0_3] : memref<4x1xf32, #tpu.memory_space<vmem>>, vector<4x1xf32>
    %3 = vector.broadcast %2 : vector<4x1xf32> to vector<4x256xf32>
    %4 = arith.mulf %1, %3 : vector<4x256xf32>
    %cst = arith.constant dense<0.000000e+00> : vector<256xf32>
    %5 = vector.multi_reduction <add>, %4, %cst [0] : vector<4x256xf32> to vector<256xf32>
    %6 = vector.shape_cast %5 : vector<256xf32> to vector<1x256xf32>
    %c0_4 = arith.constant 0 : index
    %c0_5 = arith.constant 0 : index
    %c0_6 = arith.constant 0 : index
    %7 = vector.load %arg4[%c0_4, %c0_5, %c0_6] : memref<1x1x256xf32, #tpu.memory_space<vmem>>, vector<1x1x256xf32>
    %8 = vector.shape_cast %7 : vector<1x1x256xf32> to vector<1x256xf32>
    %9 = vector.shape_cast %6 : vector<1x256xf32> to vector<1x1x256xf32>
    tpu.vector_store %arg4[%c0_4, %c0_5, %c0_6], %9 {strides = array<i32>} : memref<1x1x256xf32, #tpu.memory_space<vmem>>, vector<1x1x256xf32>,
    return
  }
  func.func @transform_0(%arg0: i32, %arg1: i32) -> (i32, i32, i32) {
    %c0_i32 = arith.constant 0 : i32
    %c0_i32_0 = arith.constant 0 : i32
    return %arg0, %c0_i32, %arg1 : i32, i32, i32
  }
  func.func @transform_1(%arg0: i32, %arg1: i32) -> (i32, i32) {
    %c0_i32 = arith.constant 0 : i32
    %c0_i32_0 = arith.constant 0 : i32
    %c0_i32_1 = arith.constant 0 : i32
    return %c0_i32, %c0_i32_0 : i32, i32
  }
  func.func @transform_2(%arg0: i32, %arg1: i32) -> (i32, i32, i32) {
    %c0_i32 = arith.constant 0 : i32
    %c0_i32_0 = arith.constant 0 : i32
    return %arg0, %c0_i32, %arg1 : i32, i32, i32
  }
}

</mosaic_0001>

<bundles_post_ra>
// kernel: tpu_custom_call.1
= control target key start
LH: loop header
LB: loop body
LE: loop exit
PB: predicated region body
PF: predicated region fallthrough
CT: control target
= control target key end

     0   :  { %7 = vsyncpa [#allocation3], 0  ;;  %s662_s0 = inlined_call_operand.hbm [shape: f32[2,4,256], index: 0, kind: input, shape index: {}]   ;;  %s663_s1 = inlined_call_operand.vmem [shape: f32[4,1], index: 1, kind: input, shape index: {}]   ;;  %s664_s2 = inlined_call_operand.hbm [shape: f32[2,1,256], index: 2, kind: output, shape index: {}]  }
   0x1   :  { %9 = vsyncpa [#allocation3 + $0x1], 0 }
   0x2   :  { %10 = vsyncpa [#allocation4], 0 }
   0x3   :  { %12 = vsyncpa [#allocation4 + $0x1], 0  ;;  %s538_s9 = smov 0   ;;  %s540_s10 = smov 0  }
   0x4   :  { %s542_s11 = smov 0   ;;  %s544_s12 = smov 0  }
   0x5   :  { %s546_s13 = smov 0   ;;  %s548_s14 = smov 0  }
   0x6 LB: > { %s327_s15 = sadd.s32 4294967295, %s519_s14   ;;  %s328_s16 = sadd.s32 4294967294, %s519_s14   ;;  %s519_s14 = sphi %s548_s14, %s18_s14   ;;  %s515_s13 = sphi %s546_s13, %s673_s13   ;;  %s511_s12 = sphi %s544_s12, %s672_s12   ;;  %s507_s11 = sphi %s542_s11, %s671_s11   ;;  %s503_s10 = sphi %s540_s10, %s670_s10   ;;  %s499_s9 = sphi %s538_s9, %s669_s9  }
   0x7   : > { %s30_s17 = sadd.s32 1, %s515_s13  ;;  %s39_s18 = sadd.s32 1, %s507_s11 }
   0x8   : > { %p32_p0 = scmp.ge.s32.totalorder %s30_s17, 2  ;;  %p46_p1 = scmp.ne.s32.totalorder %s507_s11, %s503_s10 }
   0x9   : > { %p47_p2 = scmp.eq.s32.totalorder %s519_s14, 0  ;;  %p52_p3 = scmp.ne.s32.totalorder %s503_s10, %s499_s9 }
   0xa   : > { %s675_s17 = smov (%p32_p0, %s30_s17), 0  ;;  %p53_p5 = scmp.eq.s32.totalorder %s327_s15, 0 }
   0xb   : > { %p579_p4 = por %p47_p2, %p46_p1  ;;  %s34_s20 = ssub.s32 %s515_s13, %s675_s17 }
   0xc   : > { %p99_p6 = scmp.eq.s32.totalorder %s327_s15, 1  ;;  %p37_p7 = scmp.eq.s32.totalorder %s34_s20, 0 }
   0xd   : > { %p585_p8 = por %p53_p5, %p52_p3  ;;  %p105_p10 = scmp.eq.s32.totalorder %s328_s16, 1 }
   0xe   : > { %p589_p9 = por %p99_p6, %p46_p1  ;;  %p330_p12 = scmp.ge.s32.totalorder %s519_s14, 2 }
   0xf   : > { %s594_s23 = scalar_select %p37_p7, %s507_s11, %s39_s18  }
  0x10   : > { %p596_p11 = por %p105_p10, %p52_p3  ;;  %p354_p13 = scmp.lt.s32.totalorder %s519_s14, 2 }
  0x11   : > { %s128_s25 = sand.u32 1, %s507_s11   ;;  %s341_s27 = sshll.u32 %s515_s13, 3 }
  0x12   : > { %s331_s26 = sshll.u32 %s128_s25, 3  ;;  %s139_s30 = scalar_lea.hbm %s662_s0, %s341_s27 }
  0x13   : > { %s132_s3 = scalar_lea.vmem [#allocation2], %s331_s26  ;;  %s141_s5 = sshll.u32 %s139_s30, 4  ;;  %s142_s5 = int_to_ptr.hbm [resolvable:$true] %s141_s5 }
  0x14   : > { %s143_s4 = sshll.u32 %s132_s3, 4  ;;  %p347_p0 = pnand %p354_p13, %p579_p4  ;;  %s144_s4 = int_to_ptr.vmem [resolvable:$true] %s143_s4 }
  0x15   : > { %p334_p1 = scmp.ge.s32.totalorder %s519_s14, 1  ;;  %p148_p2 = scmp.lt.s32.totalorder %s519_s14, 3 }
  0x16   : > { %s129_s6 = scalar_lea.sflag [#allocation3], %s128_s25 }
  0x17   : > { %349 = dma.hbm_to_vmem [thread:$0]  (!%p347_p0), %s142_s5, 128, %s144_s4, %s129_s6  }
  0x18   : > { %p149_p3 = pnand %p334_p1, %p148_p2 }
  0x19   : > { %s612_s7 = sand.u32 (!%p149_p3), 1, %s503_s10  }
  0x1a   : > { %152 = sbr.rel (%p149_p3) target bundleno = 180 (0xb4), region = 28  ;;  %s335_s8 = sshll.u32 (!%p149_p3), %s612_s7, 3 }
  0x1b   : > { %s155_s15 = scalar_lea.sflag (!%p149_p3), [#allocation3], %s612_s7  ;;  %s158_s16 = scalar_lea.vmem (!%p149_p3), [#allocation2], %s335_s8 }
  0x1f   : > { %490 = dma.done.wait (%p585_p8), %s155_s15, 128  }
  0x20   : > { %492 = vsyncadd (%p585_p8), %s155_s15, 4294967168  ;;  %v521_v0 = vmov 0   ;;  %v183_v1 = vld [vmem:[%s663_s1] sm:$0xf]  ;;  %v522_v2 = vmov 839922192   ;;  %v221_v23 = vlaneseq }
  0x21   : > { %406 = vset.pattern.permute.xlu0 %v521_v0  ;;  %v189_v3 = vunpack.c.l.s4 %v522_v2  ;;  %v182_v6 = vld [vmem:[%s158_s16] sm:$0xff]  ;;  %vm200_vm0 = vcmask 1043456   ;;  %s336_s20 = sshll.u32 %s612_s7, 1  ;;  %s338_s21 = sshll.u32 %s511_s12, 1  ;;  %vm218_vm1 = vcmask 1040384  }
  0x22   : > { %186 = vperm.xlu0 %406, %v183_v1   ;;  %s239_s27 = scalar_lea.hbm %s664_s2, %s338_s21  ;;  %s179_s28 = scalar_lea.vmem [#allocation5], %s336_s20  ;;  %vm223_vm2 = vcmp.lt.s32.totalorder %v221_v23, 256 }
  0x23   : > { %v190_v4 = vunpack.c.0.s8 %v189_v3  ;;  %s241_s29 = sshll.u32 %s179_s28, 4  ;;  %s243_s30 = sshll.u32 %s239_s27, 4  ;;  %s242_s29 = int_to_ptr.vmem [resolvable:$true] %s241_s29  ;;  %s244_s30 = int_to_ptr.hbm [resolvable:$true] %s243_s30 }
  0x24   : > { %s227_s12 = scalar_lea.sflag [#allocation4], %s612_s7  ;;  %s451_s3 = sshra.s32 %s244_s30, 4  ;;  %s452_s3 = int_to_ptr.hbm [resolvable:$true] %s451_s3 }
  0x25   : > { %s453_s4 = scalar_lea.hbm %s452_s3, 2  ;;  %s457_s8 = scalar_lea.hbm %s664_s2, 4 }
  0x26   : > { %p454_p4 = scmp.ne.s32.totalorder %s452_s3, %s453_s4  ;;  %p458_p7 = scmp.lt.s32.totalorder %s452_s3, %s664_s2 }
  0x27   : > { %p459_p8 = scmp.lt.s32.totalorder %s457_s8, %s453_s4 }
  0x28   : > { %p455_p5 = pnand %p454_p4, %p589_p9 }
  0x29   : > { %p460_p10 = por %p459_p8, %p458_p7 }
  0x2a   : > { %p456_p6 = pneg %p455_p5 }
  0x2c   : > { %p461_p13 = pnand %p460_p10, %p456_p6 }
  0x94   : > { %v187_v5 = vpop.permute.xlu0 %186 }
  0x95   : > { %v191_v7 = vperm.slane %v187_v5, %v190_v4 }
  0x97   : > { %v193_v8 = vmul.f32 %v191_v7, %v182_v6 }
  0x99   : > { %195 = vst [vmem:[#allocation1] ss:$2 sm:$0xff] %v193_v8 }
  0xa0   : > { %v196_v9 = vld.sshfl [vmem:[#allocation1] sm:$0xff pattern:$0x75316420]  ;;  %v197_v10 = vld.sshfl [vmem:[#allocation1 + $0x8] sm:$0xff pattern:$0x75316420] }
  0xa1   : > { %v201_v11 = vsel %vm200_vm0, %v196_v9, 0.0  ;;  %v208_v12 = vsel %vm200_vm0, %v197_v10, 0.0 }
  0xa2   : > { %v202_v13 = vrot.slane %v201_v11, 4  ;;  %v209_v14 = vrot.slane %v208_v12, 4 }
  0xa4   : > { %v203_v15 = vadd.f32 %v202_v13, %v201_v11  ;;  %v210_v16 = vadd.f32 %v209_v14, %v208_v12 }
  0xa6   : > { %v204_v17 = vrot.slane %v203_v15, 2  ;;  %v211_v18 = vrot.slane %v210_v16, 2 }
  0xa8   : > { %v205_v19 = vadd.f32 %v204_v17, %v203_v15  ;;  %v212_v20 = vadd.f32 %v211_v18, %v210_v16 }
  0xaa   : > { %v206_v21 = vrot.slane %v205_v19, 1  ;;  %v213_v22 = vrot.slane %v212_v20, 1 }
  0xac   : > { %v214_v24 = vadd.f32 %v213_v22, %v212_v20  ;;  %v207_v25 = vadd.f32 %v206_v21, %v205_v19 }
  0xae   : > { %v217_v26 = vrot.slane %v214_v24, 7 }
  0xb0   : > { %v219_v27 = vsel %vm218_vm1, %v207_v25, %v217_v26 }
  0xb1   : > { %225 = vst.msk [vmem:[%s179_s28] sm:$0x3] %vm223_vm2, %v219_v27 }
  0xb2   : > { %464 = shalt.err (!%p461_p13)
}
  0xb3   : > { %344 = dma.vmem_to_hbm [thread:$0]  (%p589_p9), %s242_s29, 32, %s244_s30, %s227_s12  }
  0xb4 PF: > { %s255_s7 = sand.u32 1, %s499_s9   ;;  %p351_p0 = pnand %p330_p12, %p596_p11 }
  0xb5   : > { %s256_s18 = scalar_lea.sflag [#allocation4], %s255_s7 }
  0xb6   : > { %p352_p1 = pneg %p351_p0 }
  0xb8   : > { %494 = dma.done.wait (%p352_p1), %s256_s18, 32  }
  0xb9   : > { %496 = vsyncadd (%p352_p1), %s256_s18, 4294967264  ;;  %s18_s14 = sadd.s32 1, %s519_s14   ;;  %s669_s9 = smov %s503_s10 }
  0xba   : > { %p15_p2 = scmp.ge.s32.totalorder %s18_s14, 4   ;;  %s670_s10 = smov %s507_s11 }
  0xbb   : > { %s671_s11 = smov %s594_s23  ;;  %s672_s12 = smov %s515_s13 }
  0xbc   : > { %s673_s13 = smov %s675_s17  ;;  %17 = sbr.rel (!%p15_p2) target bundleno = 6 (0x6), region = 73 }
  0xc1   :  { %262 = vsyncpa [#allocation3], 1 }
  0xc2   :  { %264 = vsyncpa [#allocation3 + $0x1], 1 }
  0xc3   :  { %265 = vsyncpa [#allocation4], 1 }
  0xc4   :  { %267 = vsyncpa [#allocation4 + $0x1], 1 }

</bundles_post_ra>
